<compile_context>
chip_gen: v7x
topology: tpu7x:2x2x1
jax: 0.10.0
libtpu: 0.0.40
codegen_flags: <defaults>
</compile_context>

<pallas_src>
import functools

import jax
import jax.numpy as jnp
from jax.experimental import pallas as pl
from jax.experimental.pallas import tpu as pltpu

RHN_LAYERS = 5


def rhn_cell_kernel(x_ref, h_ref, w_in_ref, b_in_ref, w_hf_ref, b_hf_ref,
                    out_ref):
    hp = h_ref.shape[1]          # lane-padded hidden size (multiple of 128)
    n_layers = w_hf_ref.shape[1] // hp

    # Input projection: (tb, IN) @ (IN, Hp) on the MXU, f32 accumulation.
    xp = jnp.dot(x_ref[...], w_in_ref[...],
                 preferred_element_type=jnp.float32) + b_in_ref[...]

    # All layer matmuls batched into ONE wide MXU op: (tb, Hp) @ (Hp, L*Hp).
    # This is independent of h, so the only serially-dependent work left is
    # the tanh/add chain below.
    z_all = jnp.dot(xp.astype(w_hf_ref.dtype), w_hf_ref[...],
                    preferred_element_type=jnp.float32) + b_hf_ref[...]

    h = h_ref[...].astype(jnp.float32)
    for i in range(n_layers):    # static unroll; 128-lane-aligned static slices
        h = jnp.tanh(z_all[:, i * hp:(i + 1) * hp] + h)

    out_ref[...] = h.astype(out_ref.dtype)


def rhn_cell_forward(x, h, w_in, b_in, w_h, b_h, *,
                     block_batch=8, compute_dtype=jnp.float32):
    """x:(B,IN) h:(B,H) w_in:(IN,H) b_in:(1,H) w_h:(L,H,H) b_h:(L,1,H)."""
    B, IN = x.shape
    H = h.shape[1]
    L = w_h.shape[0]

    # --- lane-dense padding of the hidden dim to a multiple of 128 ----------
    Hp = 128 * pl.cdiv(H, 128)
    pad_h = Hp - H
    # --- batch padding to a multiple of the (sublane-aligned) batch tile ----
    tb = max(8, (block_batch // 8) * 8)
    Bp = tb * pl.cdiv(B, tb)
    pad_b = Bp - B

    x_p = jnp.pad(x, ((0, pad_b), (0, 0)))
    h_p = jnp.pad(h, ((0, pad_b), (0, pad_h)))
    w_in_p = jnp.pad(w_in, ((0, 0), (0, pad_h)))
    b_in_p = jnp.pad(b_in, ((0, 0), (0, pad_h)))
    # (L,H,H) -> zero-pad -> (Hp, L*Hp): column block i is layer i's weight.
    w_h_p = jnp.pad(w_h, ((0, 0), (0, pad_h), (0, pad_h)))
    w_hf = jnp.transpose(w_h_p, (1, 0, 2)).reshape(Hp, L * Hp)
    b_hf = jnp.pad(b_h, ((0, 0), (0, 0), (0, pad_h))).reshape(1, L * Hp)

    # Optional bf16 cast of MXU inputs (v6e/v7x throughput, half the weight
    # DMA / VMEM).  Biases and h stay f32; accumulation is always f32.
    x_p = x_p.astype(compute_dtype)
    w_in_p = w_in_p.astype(compute_dtype)
    w_hf = w_hf.astype(compute_dtype)

    grid = (Bp // tb,)
    grid_spec = pl.GridSpec(
        grid=grid,
        in_specs=[
            pl.BlockSpec((tb, IN), lambda i: (i, 0)),
            pl.BlockSpec((tb, Hp), lambda i: (i, 0)),
            # Weights/biases: constant block index -> DMA'd once, VMEM-resident.
            pl.BlockSpec((IN, Hp), lambda i: (0, 0)),
            pl.BlockSpec((1, Hp), lambda i: (0, 0)),
            pl.BlockSpec((Hp, L * Hp), lambda i: (0, 0)),
            pl.BlockSpec((1, L * Hp), lambda i: (0, 0)),
        ],
        out_specs=pl.BlockSpec((tb, Hp), lambda i: (i, 0)),
    )

    out_p = pl.pallas_call(
        rhn_cell_kernel,
        out_shape=jax.ShapeDtypeStruct((Bp, Hp), jnp.float32),
        grid_spec=grid_spec,
        compiler_params=pltpu.CompilerParams(
            # Batch tiles are independent -> shard across TCs on v7x.
            dimension_semantics=("parallel",)),
    )(x_p, h_p, w_in_p, b_in_p, w_hf, b_hf)

    return out_p[:B, :H]


def rhn_cell_reference(x, h, w_in, b_in, w_h, b_h):
    xp = x @ w_in + b_in
    for i in range(RHN_LAYERS):
        h = jnp.tanh(xp @ w_h[i] + b_h[i] + h)
    return h


def init_params(key, input_size, hidden_size):
    # Mimics PyTorch nn.Linear default init: U(-1/sqrt(fan_in), 1/sqrt(fan_in)).
    keys = jax.random.split(key, 2 + 2 * RHN_LAYERS)
    bound_in = 1.0 / jnp.sqrt(input_size)
    bound_h = 1.0 / jnp.sqrt(hidden_size)

    # Stored as (in_features, out_features) == PyTorch weight transposed.
    w_in = jax.random.uniform(keys[0], (input_size, hidden_size),
                              jnp.float32, -bound_in, bound_in)
    b_in = jax.random.uniform(keys[1], (1, hidden_size),
                              jnp.float32, -bound_in, bound_in)

    w_h_list, b_h_list = [], []
    for i in range(RHN_LAYERS):
        w_h_list.append(jax.random.uniform(keys[2 + 2 * i],
                                           (hidden_size, hidden_size),
                                           jnp.float32, -bound_h, bound_h))
        b_h_list.append(jax.random.uniform(keys[3 + 2 * i],
                                           (1, hidden_size),
                                           jnp.float32, -bound_h, bound_h))
    w_h = jnp.stack(w_h_list, axis=0)          # (L, H, H)
    b_h = jnp.stack(b_h_list, axis=0)          # (L, 1, H)
    return w_in, b_in, w_h, b_h


if __name__ == "__main__":
    batch = 8
    input_size = 16
    hidden_size = 32

    key = jax.random.PRNGKey(0)
    k_x, k_h, k_p = jax.random.split(key, 3)

    x = jax.random.normal(k_x, (batch, input_size), jnp.float32)
    h = jax.random.normal(k_h, (batch, hidden_size), jnp.float32)
    w_in, b_in, w_h, b_h = init_params(k_p, input_size, hidden_size)

    fwd = jax.jit(functools.partial(rhn_cell_forward, block_batch=8,
                                    compute_dtype=jnp.float32))
    out = jax.block_until_ready(fwd(x, h, w_in, b_in, w_h, b_h))

    ref = rhn_cell_reference(x, h, w_in, b_in, w_h, b_h)
    assert out.shape == (batch, hidden_size)
    assert jnp.allclose(out, ref, atol=1e-5, rtol=1e-5)

    print("KERNEL_OK")
</pallas_src>

<mosaic_0001>
module attributes {stable_mosaic.version = 11 : i64} {
  func.func @rhn_cell_kernel(%arg0: i32, %arg1: memref<8x16xf32, #tpu.memory_space<vmem>>, %arg2: memref<8x128xf32, #tpu.memory_space<vmem>>, %arg3: memref<16x128xf32, #tpu.memory_space<vmem>>, %arg4: memref<1x128xf32, #tpu.memory_space<vmem>>, %arg5: memref<128x640xf32, #tpu.memory_space<vmem>>, %arg6: memref<1x640xf32, #tpu.memory_space<vmem>>, %arg7: memref<8x128xf32, #tpu.memory_space<vmem>>) attributes {dimension_semantics = [#tpu.dimension_semantics<parallel>], iteration_bounds = array<i64: 1>, scalar_prefetch = 0 : i64, scratch_operands = 0 : i64, tpu.core_type = #tpu.core_type<tc>, window_params = [{transform_indices = @transform_0, window_bounds = array<i64: 8, 16>}, {transform_indices = @transform_1, window_bounds = array<i64: 8, 128>}, {pipeline_mode = #tpu.pipeline_mode<synchronous>, transform_indices = @transform_2, window_bounds = array<i64: 16, 128>}, {pipeline_mode = #tpu.pipeline_mode<synchronous>, transform_indices = @transform_3, window_bounds = array<i64: 1, 128>}, {pipeline_mode = #tpu.pipeline_mode<synchronous>, transform_indices = @transform_4, window_bounds = array<i64: 128, 640>}, {pipeline_mode = #tpu.pipeline_mode<synchronous>, transform_indices = @transform_5, window_bounds = array<i64: 1, 640>}, {transform_indices = @transform_6, window_bounds = array<i64: 8, 128>}]} {
    %c0 = arith.constant 0 : index
    %c0_0 = arith.constant 0 : index
    %0 = vector.load %arg1[%c0, %c0_0] : memref<8x16xf32, #tpu.memory_space<vmem>>, vector<8x16xf32>
    %c0_1 = arith.constant 0 : index
    %c0_2 = arith.constant 0 : index
    %1 = vector.load %arg3[%c0_1, %c0_2] : memref<16x128xf32, #tpu.memory_space<vmem>>, vector<16x128xf32>
    %cst = arith.constant dense<0.000000e+00> : vector<8x128xf32>
    %2 = tpu.matmul %0, %1, %cst {dimension_numbers = #tpu.dot_dimension_numbers<[1], [0], [0], [1], [0, 0, 1, 1], [], []>} : vector<8x16xf32>, vector<16x128xf32>, vector<8x128xf32> -> vector<8x128xf32>
    %c0_3 = arith.constant 0 : index
    %c0_4 = arith.constant 0 : index
    %3 = vector.load %arg4[%c0_3, %c0_4] : memref<1x128xf32, #tpu.memory_space<vmem>>, vector<1x128xf32>
    %4 = vector.broadcast %3 : vector<1x128xf32> to vector<8x128xf32>
    %5 = arith.addf %2, %4 : vector<8x128xf32>
    %c0_5 = arith.constant 0 : index
    %c0_6 = arith.constant 0 : index
    %6 = vector.load %arg5[%c0_5, %c0_6] : memref<128x640xf32, #tpu.memory_space<vmem>>, vector<128x640xf32>
    %cst_7 = arith.constant dense<0.000000e+00> : vector<8x640xf32>
    %7 = tpu.matmul %5, %6, %cst_7 {dimension_numbers = #tpu.dot_dimension_numbers<[1], [0], [0], [1], [0, 0, 1, 1], [], []>} : vector<8x128xf32>, vector<128x640xf32>, vector<8x640xf32> -> vector<8x640xf32>
    %c0_8 = arith.constant 0 : index
    %c0_9 = arith.constant 0 : index
    %8 = vector.load %arg6[%c0_8, %c0_9] : memref<1x640xf32, #tpu.memory_space<vmem>>, vector<1x640xf32>
    %9 = vector.broadcast %8 : vector<1x640xf32> to vector<8x640xf32>
    %10 = arith.addf %7, %9 : vector<8x640xf32>
    %c0_10 = arith.constant 0 : index
    %c0_11 = arith.constant 0 : index
    %11 = vector.load %arg2[%c0_10, %c0_11] : memref<8x128xf32, #tpu.memory_space<vmem>>, vector<8x128xf32>
    %12 = vector.extract_strided_slice %10 {offsets = [0, 0], sizes = [8, 128], strides = [1, 1]} : vector<8x640xf32> to vector<8x128xf32>
    %13 = arith.addf %12, %11 : vector<8x128xf32>
    %14 = math.tanh %13 : vector<8x128xf32>
    %15 = vector.extract_strided_slice %10 {offsets = [0, 128], sizes = [8, 128], strides = [1, 1]} : vector<8x640xf32> to vector<8x128xf32>
    %16 = arith.addf %15, %14 : vector<8x128xf32>
    %17 = math.tanh %16 : vector<8x128xf32>
    %18 = vector.extract_strided_slice %10 {offsets = [0, 256], sizes = [8, 128], strides = [1, 1]} : vector<8x640xf32> to vector<8x128xf32>
    %19 = arith.addf %18, %17 : vector<8x128xf32>
    %20 = math.tanh %19 : vector<8x128xf32>
    %21 = vector.extract_strided_slice %10 {offsets = [0, 384], sizes = [8, 128], strides = [1, 1]} : vector<8x640xf32> to vector<8x128xf32>
    %22 = arith.addf %21, %20 : vector<8x128xf32>
    %23 = math.tanh %22 : vector<8x128xf32>
    %24 = vector.extract_strided_slice %10 {offsets = [0, 512], sizes = [8, 128], strides = [1, 1]} : vector<8x640xf32> to vector<8x128xf32>
    %25 = arith.addf %24, %23 : vector<8x128xf32>
    %26 = math.tanh %25 : vector<8x128xf32>
    %c0_12 = arith.constant 0 : index
    %c0_13 = arith.constant 0 : index
    %27 = vector.load %arg7[%c0_12, %c0_13] : memref<8x128xf32, #tpu.memory_space<vmem>>, vector<8x128xf32>
    tpu.vector_store %arg7[%c0_12, %c0_13], %26 {strides = array<i32>} : memref<8x128xf32, #tpu.memory_space<vmem>>, vector<8x128xf32>,
    return
  }
  func.func @transform_0(%arg0: i32) -> (i32, i32) {
    %c0_i32 = arith.constant 0 : i32
    %c0_i32_0 = arith.constant 0 : i32
    return %arg0, %c0_i32 : i32, i32
  }
  func.func @transform_1(%arg0: i32) -> (i32, i32) {
    %c0_i32 = arith.constant 0 : i32
    %c0_i32_0 = arith.constant 0 : i32
    return %arg0, %c0_i32 : i32, i32
  }
  func.func @transform_2(%arg0: i32) -> (i32, i32) {
    %c0_i32 = arith.constant 0 : i32
    %c0_i32_0 = arith.constant 0 : i32
    %c0_i32_1 = arith.constant 0 : i32
    return %c0_i32, %c0_i32_0 : i32, i32
  }
  func.func @transform_3(%arg0: i32) -> (i32, i32) {
    %c0_i32 = arith.constant 0 : i32
    %c0_i32_0 = arith.constant 0 : i32
    %c0_i32_1 = arith.constant 0 : i32
    return %c0_i32, %c0_i32_0 : i32, i32
  }
  func.func @transform_4(%arg0: i32) -> (i32, i32) {
    %c0_i32 = arith.constant 0 : i32
    %c0_i32_0 = arith.constant 0 : i32
    %c0_i32_1 = arith.constant 0 : i32
    return %c0_i32, %c0_i32_0 : i32, i32
  }
  func.func @transform_5(%arg0: i32) -> (i32, i32) {
    %c0_i32 = arith.constant 0 : i32
    %c0_i32_0 = arith.constant 0 : i32
    %c0_i32_1 = arith.constant 0 : i32
    return %c0_i32, %c0_i32_0 : i32, i32
  }
  func.func @transform_6(%arg0: i32) -> (i32, i32) {
    %c0_i32 = arith.constant 0 : i32
    %c0_i32_0 = arith.constant 0 : i32
    return %arg0, %c0_i32 : i32, i32
  }
}

</mosaic_0001>

<bundles_post_ra>
// kernel: rhn_cell_forward.1
= control target key start
LH: loop header
LB: loop body
LE: loop exit
PB: predicated region body
PF: predicated region fallthrough
CT: control target
= control target key end

     0   :  { %v646_v2 = vmov 0.0|0.0   ;;  %vm647_vm0 = vmmov 0   ;;  %v648_v4 = vmov 0.0   ;;  %vm34_vm1 = vcmask 130048   ;;  %s971_s0 = inlined_call_operand.vmem [shape: f32[8,16], index: 0, kind: input, shape index: {}]   ;;  %s972_s1 = inlined_call_operand.vmem [shape: f32[8,128], index: 1, kind: input, shape index: {}]   ;;  %s973_s2 = inlined_call_operand.vmem [shape: f32[16,128], index: 2, kind: input, shape index: {}]   ;;  %s974_s3 = inlined_call_operand.vmem [shape: f32[1,128], index: 3, kind: input, shape index: {}]   ;;  %s975_s4 = inlined_call_operand.vmem [shape: f32[128,640], index: 4, kind: input, shape index: {}]   ;;  %s976_s5 = inlined_call_operand.vmem [shape: f32[1,640], index: 5, kind: input, shape index: {}]   ;;  %s977_s6 = inlined_call_operand.hbm [shape: f32[8,128], index: 6, kind: output, shape index: {}]  }
   0x1   :  { %v25_v0 = vld [vmem:[%s973_s2] sm:$0xff]  ;;  %v26_v1 = vld [vmem:[%s973_s2 + $0x8] sm:$0xff]  ;;  %517 = vmatprep.subr.bf16.mxu0 %v646_v2  ;;  %479 = vmatprep.mubr.msk.f32.mxu0 %vm647_vm0, %v648_v4  ;;  %v114_v7 = vld [vmem:[%s975_s4 + $0x30] sm:$0xff] }
   0x2   :  { %v518_v3 = vpack.c.bf16 %v26_v1, %v25_v0  ;;  %v24_v5 = vld [vmem:[%s971_s0] sm:$0xff]  ;;  %v109_v6 = vld [vmem:[%s975_s4 + $0x8] sm:$0xff]  ;;  %v111_v11 = vld [vmem:[%s975_s4 + $0x18] sm:$0xff]  ;;  %279 = vmatprep.mubr.f32.mxu1 %v648_v4 }
   0x3   :  { %v108_v8 = vld [vmem:[%s975_s4] sm:$0xff]  ;;  %v520_v9 = vpack.c.bf16 %v114_v7, %v109_v6  ;;  %v113_v10 = vld [vmem:[%s975_s4 + $0x28] sm:$0xff]  ;;  %v110_v15 = vld [vmem:[%s975_s4 + $0x10] sm:$0xff] }
   0x4   :  { %v116_v12 = vld [vmem:[%s975_s4 + $0x40] sm:$0xff]  ;;  %519 = vmatpush3.bf16.msra.mxu0 %v518_v3  ;;  %v522_v13 = vpack.c.bf16 %v113_v10, %v108_v8  ;;  %v115_v16 = vld [vmem:[%s975_s4 + $0x38] sm:$0xff]  ;;  %v118_v20 = vld [vmem:[%s975_s4 + $0x50] sm:$0xff] }
   0x5   :  { %v552_v14 = vpack.c.bf16 %v116_v12, %v111_v11  ;;  %v119_v17 = vld [vmem:[%s975_s4 + $0x58] sm:$0xff]  ;;  %521 = vmatprep.subr.bf16.mxu1 %v520_v9  ;;  %v554_v18 = vpack.c.bf16 %v115_v16, %v110_v15  ;;  %v124_v19 = vld [vmem:[%s975_s4 + $0x80] sm:$0xff]  ;;  %v121_v24 = vld [vmem:[%s975_s4 + $0x68] sm:$0xff] }
   0x6   :  { %v123_v21 = vld [vmem:[%s975_s4 + $0x78] sm:$0xff]  ;;  %523 = vmatpush1.bf16.msra.mxu1 %v522_v13  ;;  %v524_v22 = vpack.c.bf16 %v124_v19, %v119_v17  ;;  %v126_v25 = vld [vmem:[%s975_s4 + $0x90] sm:$0xff]  ;;  %v120_v26 = vld [vmem:[%s975_s4 + $0x60] sm:$0xff] }
   0x7   :  { %553 = vmatprep.subr.bf16.mxu0 %v552_v14  ;;  %v526_v23 = vpack.c.bf16 %v123_v21, %v118_v20  ;;  %480 = vmatmul.mubr.msk.f32.vlgmr.msra.gmra.mrb[0].mxu0 %vm34_vm1, %v24_v5  ;;  %v556_v27 = vpack.c.bf16 %v126_v25, %v121_v24  ;;  %v125_v28 = vld [vmem:[%s975_s4 + $0x88] sm:$0xff]  ;;  %v134_v30 = vld [vmem:[%s975_s4 + $0xd0] sm:$0xff]  ;;  %v128_v33 = vld [vmem:[%s975_s4 + $0xa0] sm:$0xff] }
   0x8   :  { %v129_v29 = vld [vmem:[%s975_s4 + $0xa8] sm:$0xff]  ;;  %555 = vmatpush1.bf16.msra.mxu0 %v554_v18  ;;  %525 = vmatprep.subr.bf16.mxu1 %v524_v22  ;;  %v558_v31 = vpack.c.bf16 %v125_v28, %v120_v26  ;;  %v131_v35 = vld [vmem:[%s975_s4 + $0xb8] sm:$0xff]  ;;  %v136_v36 = vld [vmem:[%s975_s4 + $0xe0] sm:$0xff] }
   0x9   :  { %v528_v32 = vpack.c.bf16 %v134_v30, %v129_v29  ;;  %v133_v34 = vld [vmem:[%s975_s4 + $0xc8] sm:$0xff]  ;;  %557 = vmatprep.subr.bf16.mxu0 %v556_v27  ;;  %v130_v37 = vld [vmem:[%s975_s4 + $0xb0] sm:$0xff]  ;;  %v135_v38 = vld [vmem:[%s975_s4 + $0xd8] sm:$0xff]  ;;  %350 = vmatprep.mubr.f32.mxu0 %v648_v4  ;;  %v560_v40 = vpack.c.bf16 %v136_v36, %v131_v35 }
   0xa   :  { %527 = vmatpush1.bf16.msra.mxu1 %v526_v23  ;;  %v530_v39 = vpack.c.bf16 %v133_v34, %v128_v33  ;;  %v139_v41 = vld [vmem:[%s975_s4 + $0xf8] sm:$0xff]  ;;  %v144_v42 = vld [vmem:[%s975_s4 + $0x120] sm:$0xff]  ;;  %v138_v43 = vld [vmem:[%s975_s4 + $0xf0] sm:$0xff]  ;;  %v562_v48 = vpack.c.bf16 %v135_v38, %v130_v37 }
   0xb   :  { %529 = vmatprep.subr.bf16.mxu1 %v528_v32  ;;  %v532_v44 = vpack.c.bf16 %v144_v42, %v139_v41  ;;  %v143_v45 = vld [vmem:[%s975_s4 + $0x118] sm:$0xff]  ;;  %v141_v46 = vld [vmem:[%s975_s4 + $0x108] sm:$0xff]  ;;  %v146_v47 = vld [vmem:[%s975_s4 + $0x130] sm:$0xff] }
   0xc   :  { %559 = vmatpush1.bf16.msra.mxu0 %v558_v31  ;;  %v149_v49 = vld [vmem:[%s975_s4 + $0x148] sm:$0xff]  ;;  %v564_v50 = vpack.c.bf16 %v146_v47, %v141_v46  ;;  %v140_v51 = vld [vmem:[%s975_s4 + $0x100] sm:$0xff]  ;;  %v154_v53 = vld [vmem:[%s975_s4 + $0x170] sm:$0xff]  ;;  %v534_v54 = vpack.c.bf16 %v143_v45, %v138_v43 }
   0xd   :  { %561 = vmatprep.subr.bf16.mxu0 %v560_v40  ;;  %v145_v52 = vld [vmem:[%s975_s4 + $0x128] sm:$0xff]  ;;  %v151_v55 = vld [vmem:[%s975_s4 + $0x158] sm:$0xff]  ;;  %v156_v56 = vld [vmem:[%s975_s4 + $0x180] sm:$0xff]  ;;  %v536_v57 = vpack.c.bf16 %v154_v53, %v149_v49 }
   0xe   :  { %531 = vmatpush1.bf16.msra.mxu1 %v530_v39  ;;  %v148_v58 = vld [vmem:[%s975_s4 + $0x140] sm:$0xff]  ;;  %v153_v59 = vld [vmem:[%s975_s4 + $0x168] sm:$0xff]  ;;  %v566_v60 = vpack.c.bf16 %v145_v52, %v140_v51  ;;  %v159_v61 = vld [vmem:[%s975_s4 + $0x198] sm:$0xff]  ;;  %v568_v63 = vpack.c.bf16 %v156_v56, %v151_v55 }
   0xf   :  { %533 = vmatprep.subr.bf16.mxu1 %v532_v44  ;;  %v164_v62 = vld [vmem:[%s975_s4 + $0x1c0] sm:$0xff]  ;;  %v150_v0 = vld [vmem:[%s975_s4 + $0x150] sm:$0xff]  ;;  %v155_v1 = vld [vmem:[%s975_s4 + $0x178] sm:$0xff]  ;;  %v538_v3 = vpack.c.bf16 %v153_v59, %v148_v58 }
  0x10   :  { %563 = vmatpush1.bf16.msra.mxu0 %v562_v48  ;;  %v161_v5 = vld [vmem:[%s975_s4 + $0x1a8] sm:$0xff]  ;;  %v166_v6 = vld [vmem:[%s975_s4 + $0x1d0] sm:$0xff]  ;;  %v540_v7 = vpack.c.bf16 %v164_v62, %v159_v61  ;;  %v163_v9 = vld [vmem:[%s975_s4 + $0x1b8] sm:$0xff]  ;;  %v570_v10 = vpack.c.bf16 %v155_v1, %v150_v0 }
  0x11   :  { %565 = vmatprep.subr.bf16.mxu0 %v564_v50  ;;  %v158_v8 = vld [vmem:[%s975_s4 + $0x190] sm:$0xff]  ;;  %v169_v11 = vld [vmem:[%s975_s4 + $0x1e8] sm:$0xff]  ;;  %v572_v13 = vpack.c.bf16 %v166_v6, %v161_v5  ;;  %v160_v14 = vld [vmem:[%s975_s4 + $0x1a0] sm:$0xff] }
  0x12   :  { %535 = vmatpush1.bf16.msra.mxu1 %v534_v54  ;;  %v174_v12 = vld [vmem:[%s975_s4 + $0x210] sm:$0xff]  ;;  %v165_v15 = vld [vmem:[%s975_s4 + $0x1c8] sm:$0xff]  ;;  %v542_v16 = vpack.c.bf16 %v163_v9, %v158_v8  ;;  %v171_v17 = vld [vmem:[%s975_s4 + $0x1f8] sm:$0xff] }
  0x13   :  { %537 = vmatprep.subr.bf16.mxu1 %v536_v57  ;;  %v176_v18 = vld [vmem:[%s975_s4 + $0x220] sm:$0xff]  ;;  %v544_v19 = vpack.c.bf16 %v174_v12, %v169_v11  ;;  %v173_v21 = vld [vmem:[%s975_s4 + $0x208] sm:$0xff] }
  0x14   :  { %567 = vmatpush1.bf16.msra.mxu0 %v566_v60  ;;  %v168_v20 = vld [vmem:[%s975_s4 + $0x1e0] sm:$0xff] }
  0x15   :  { %569 = vmatprep.subr.bf16.mxu0 %v568_v63 }
  0x16   :  { %539 = vmatpush1.bf16.msra.mxu1 %v538_v3 }
  0x17   :  { %541 = vmatprep.subr.bf16.mxu1 %v540_v7 }
  0x18   :  { %11 = vsyncpa [#allocation3], 0  ;;  %571 = vmatpush1.bf16.msra.mxu0 %v570_v10  ;;  %v574_v22 = vpack.c.bf16 %v165_v15, %v160_v14  ;;  %v179_v23 = vld [vmem:[%s975_s4 + $0x238] sm:$0xff]  ;;  %v184_v24 = vld [vmem:[%s975_s4 + $0x260] sm:$0xff]  ;;  %v576_v25 = vpack.c.bf16 %v176_v18, %v171_v17  ;;  %v546_v28 = vpack.c.bf16 %v173_v21, %v168_v20  ;;  %v190_v5 = vlaneseq }
  0x19   :  { %573 = vmatprep.subr.bf16.mxu0 %v572_v13  ;;  %v170_v26 = vld [vmem:[%s975_s4 + $0x1f0] sm:$0xff]  ;;  %v175_v27 = vld [vmem:[%s975_s4 + $0x218] sm:$0xff]  ;;  %v181_v29 = vld [vmem:[%s975_s4 + $0x248] sm:$0xff]  ;;  %v548_v31 = vpack.c.bf16 %v184_v24, %v179_v23 }
  0x1a   :  { %543 = vmatpush1.bf16.msra.mxu1 %v542_v16  ;;  %v186_v30 = vld [vmem:[%s975_s4 + $0x270] sm:$0xff]  ;;  %v183_v33 = vld [vmem:[%s975_s4 + $0x258] sm:$0xff]  ;;  %v578_v34 = vpack.c.bf16 %v175_v27, %v170_v26  ;;  %v180_v37 = vld [vmem:[%s975_s4 + $0x240] sm:$0xff]  ;;  %v191_v6 = vshrl.u32 %v190_v5, 7 }
  0x1b   :  { %545 = vmatprep.subr.bf16.mxu1 %v544_v19  ;;  %v178_v32 = vld [vmem:[%s975_s4 + $0x230] sm:$0xff]  ;;  %v580_v35 = vpack.c.bf16 %v186_v30, %v181_v29  ;;  %v185_v38 = vld [vmem:[%s975_s4 + $0x268] sm:$0xff]  ;;  %v112_v40 = vld [vmem:[%s975_s4 + $0x20] sm:$0xff] }
  0x1c   :  { %575 = vmatpush1.bf16.msra.mxu0 %v574_v22  ;;  %v550_v36 = vpack.c.bf16 %v183_v33, %v178_v32  ;;  %v582_v39 = vpack.c.bf16 %v185_v38, %v180_v37  ;;  %v117_v41 = vld [vmem:[%s975_s4 + $0x48] sm:$0xff]  ;;  %v453_v42 = vld [vmem:[%s974_s3] ss:$0 sm:$0xff]  ;;  %v122_v47 = vld [vmem:[%s975_s4 + $0x70] sm:$0xff]  ;;  %v192_v7 = vsub.s32 0, %v191_v6  ;;  %v196_v16 = vsub.s32 1, %v191_v6 }
  0x1d   :  { %577 = vmatprep.subr.bf16.mxu0 %v576_v25  ;;  %v585_v44 = vpack.c.bf16 %v117_v41, %v112_v40  ;;  %v127_v48 = vld [vmem:[%s975_s4 + $0x98] sm:$0xff]  ;;  %v132_v50 = vld [vmem:[%s975_s4 + $0xc0] sm:$0xff]  ;;  %v137_v51 = vld [vmem:[%s975_s4 + $0xe8] sm:$0xff]  ;;  %v200_v21 = vsub.s32 2, %v191_v6  ;;  %v204_v26 = vsub.s32 3, %v191_v6  ;;  %v208_v33 = vsub.s32 4, %v191_v6 }
  0x1e   :  { %547 = vmatpush1.bf16.msra.mxu1 %v546_v28  ;;  %v588_v49 = vpack.c.bf16 %v127_v48, %v122_v47  ;;  %v591_v52 = vpack.c.bf16 %v137_v51, %v132_v50  ;;  %v142_v53 = vld [vmem:[%s975_s4 + $0x110] sm:$0xff]  ;;  %v152_v55 = vld [vmem:[%s975_s4 + $0x160] sm:$0xff]  ;;  %v157_v56 = vld [vmem:[%s975_s4 + $0x188] sm:$0xff] }
  0x1f   :  { %549 = vmatprep.subr.bf16.mxu1 %v548_v31  ;;  %v597_v57 = vpack.c.bf16 %v157_v56, %v152_v55  ;;  %v162_v58 = vld [vmem:[%s975_s4 + $0x1b0] sm:$0xff]  ;;  %v167_v59 = vld [vmem:[%s975_s4 + $0x1d8] sm:$0xff]  ;;  %v172_v61 = vld [vmem:[%s975_s4 + $0x200] sm:$0xff] }
  0x20   :  { %579 = vmatpush1.bf16.msra.mxu0 %v578_v34  ;;  %v600_v60 = vpack.c.bf16 %v167_v59, %v162_v58  ;;  %v177_v62 = vld [vmem:[%s975_s4 + $0x228] sm:$0xff]  ;;  %v182_v0 = vld [vmem:[%s975_s4 + $0x250] sm:$0xff]  ;;  %v187_v1 = vld [vmem:[%s975_s4 + $0x278] sm:$0xff] }
  0x21   :  { %581 = vmatprep.subr.bf16.mxu0 %v580_v35  ;;  %v603_v63 = vpack.c.bf16 %v177_v62, %v172_v61  ;;  %v606_v3 = vpack.c.bf16 %v187_v1, %v182_v0  ;;  %v188_v8 = vld [vmem:[%s976_s5] sm:$0x1f] }
  0x22   :  { %551 = vmatpush1.bf16.msra.mxu1 %v550_v36  ;;  %v193_v9 = vrot.slane %v188_v8, %v192_v7  ;;  %v427_v11 = vld [vmem:[%s972_s1] sm:$0xff]  ;;  %v197_v17 = vrot.slane %v188_v8, %v196_v16  ;;  %v201_v22 = vrot.slane %v188_v8, %v200_v21  ;;  %v205_v29 = vrot.slane %v188_v8, %v204_v26  ;;  %s649_s1 = smov [#allocation2]  }
  0x23   :  { %584 = vmatprep.subr.bf16.mxu1 %v646_v2  ;;  %v209_v34 = vrot.slane %v188_v8, %v208_v33 }
  0x24   :  { %583 = vmatpush1.bf16.msra.mxu0 %v582_v39 }
  0xda   :  { %v104_v43 = vpop.f32.mrb[0].mxu0 }
  0xdb   :  { %v105_v45 = vadd.f32 %v453_v42, %v104_v43  ;;  %v481_v46 = vpop.f32.mrb[1].mxu0 }
  0xdd   :  { %280 = vmatmul.mubr.f32.vlgmr.msra.gmra.mrb[0].mxu1 %v105_v45  ;;  %351 = vmatmul.mubr.f32.vlgmr.msra.gmra.mrb[2].mxu0 %v105_v45 }
  0xde   :  { %586 = vmatpush3.bf16.msra.mxu1 %v585_v44  ;;  %514 = vmatprep.mubr.msk.f32.mxu1 %vm647_vm0, %v648_v4  ;;  %v147_v4 = vld [vmem:[%s975_s4 + $0x138] sm:$0xff]  ;;  %s445_s4 = sshll.u32 %s649_s1, 4  ;;  %s446_s4 = int_to_ptr.vmem [resolvable:$true] %s445_s4 }
  0xdf   :  { %587 = vmatprep.subr.bf16.mxu1 %v646_v2  ;;  %v594_v54 = vpack.c.bf16 %v147_v4, %v142_v53  ;;  %s622_s5 = scalar_lea.vmem %s446_s4, 128  ;;  %p627_p1 = scmp.lt.s32.totalorder %s446_s4, %s446_s4 }
  0xe0   :  { %p623_p0 = scmp.ne.s32.totalorder %s446_s4, %s622_s5  ;;  %p628_p2 = scmp.lt.s32.totalorder %s622_s5, %s622_s5 }
  0xe2   :  { %589 = vmatpush3.bf16.msra.mxu1 %v588_v49  ;;  %p629_p3 = por %p628_p2, %p627_p1 }
  0xe3   :  { %590 = vmatprep.subr.bf16.mxu1 %v646_v2 }
  0xe4   :  { %p630_p4 = pnand %p629_p3, %p623_p0 }
  0xe6   :  { %592 = vmatpush3.bf16.msra.mxu1 %v591_v52 }
  0xe7   :  { %593 = vmatprep.subr.bf16.mxu1 %v646_v2 }
  0xea   :  { %595 = vmatpush3.bf16.msra.mxu1 %v594_v54 }
  0xeb   :  { %596 = vmatprep.subr.bf16.mxu1 %v646_v2 }
  0xee   :  { %598 = vmatpush3.bf16.msra.mxu1 %v597_v57 }
  0xef   :  { %599 = vmatprep.subr.bf16.mxu1 %v646_v2 }
  0xf2   :  { %601 = vmatpush3.bf16.msra.mxu1 %v600_v60 }
  0xf3   :  { %602 = vmatprep.subr.bf16.mxu1 %v646_v2 }
  0xf6   :  { %604 = vmatpush3.bf16.msra.mxu1 %v603_v63 }
  0xf7   :  { %605 = vmatprep.subr.bf16.mxu1 %v646_v2 }
  0xfa   :  { %607 = vmatpush3.bf16.msra.mxu1 %v606_v3 }
  0xfd   :  { %515 = vmatmul.mubr.f32.vlgmr.msra.gmra.mrb[2].mxu1 %v105_v45 }
 0x1b0   :  { %v281_v10 = vpop.f32.mrb[0].mxu1  ;;  %v352_v12 = vpop.f32.mrb[2].mxu0 }
 0x1b1   :  { %v282_v13 = vadd.f32 %v281_v10, %v193_v9  ;;  %v283_v14 = vpop.f32.mrb[1].mxu1  ;;  %v354_v15 = vpop.f32.mrb[3].mxu0  ;;  %v353_v23 = vadd.f32 %v352_v12, %v201_v22 }
 0x1b2   :  { %v284_v18 = vadd.f32 %v283_v14, %v197_v17  ;;  %v355_v30 = vadd.f32 %v354_v15, %v205_v29 }
 0x1b3   :  { %v428_v2 = vadd.f32 %v427_v11, %v282_v13 }
 0x1b5   :  { %612 = vtanh.f32 %v428_v2 }
 0x1bf   :  { %v613_v19 = vpop.eup %612 }
 0x1c0   :  { %v430_v20 = vadd.f32 %v613_v19, %v284_v18 }
 0x1c2   :  { %614 = vtanh.f32 %v430_v20 }
 0x1cc   :  { %v615_v24 = vpop.eup %614 }
 0x1cd   :  { %v432_v25 = vadd.f32 %v615_v24, %v353_v23 }
 0x1cf   :  { %616 = vtanh.f32 %v432_v25 }
 0x1d0   :  { %v423_v27 = vpop.f32.mrb[2].mxu1 }
 0x1d1   :  { %v516_v28 = vpop.f32.mrb[3].mxu1  ;;  %v424_v35 = vadd.f32 %v423_v27, %v209_v34 }
 0x1d9   :  { %v617_v31 = vpop.eup %616 }
 0x1da   :  { %v434_v32 = vadd.f32 %v617_v31, %v355_v30 }
 0x1dc   :  { %618 = vtanh.f32 %v434_v32 }
 0x1e6   :  { %v619_v36 = vpop.eup %618 }
 0x1e7   :  { %v436_v37 = vadd.f32 %v619_v36, %v424_v35 }
 0x1e9   :  { %620 = vtanh.f32 %v436_v37 }
 0x1f3   :  { %v621_v38 = vpop.eup %620 }
 0x1f4   :  { %438 = vst [vmem:[#allocation2] sm:$0xff] %v621_v38 }
 0x1f5   :  { %633 = shalt.err (!%p630_p4)
}
 0x1f6   :  { %s634_s0 = scalar_lea.hbm %s977_s6, 128 }
 0x1f7   :  { %p635_p5 = scmp.ne.s32.totalorder %s977_s6, %s634_s0  ;;  %p638_p6 = scmp.lt.u32.totalorder %s634_s0, %s977_s6 }
 0x1f9   :  { %p640_p7 = pnand %p638_p6, %p635_p5 }
 0x1fb   :  { %643 = shalt.err (!%p640_p7)
}
 0x1fc   :  { %448 = dma.vmem_to_hbm [thread:$0]  %s446_s4, 128, %s977_s6, [#allocation3]  }
 0x1fd   :  { %644 = dma.done.wait [#allocation3], 128  }
 0x1fe   :  { %645 = vsyncadd [#allocation3], 4294967168 }
 0x1ff   :  { %452 = vsyncpa [#allocation3], 1 }

</bundles_post_ra>
